<compile_context>
chip_gen: v6e
topology: v6e:2x2x1
jax: 0.10.0
libtpu: 0.0.40
codegen_flags: <defaults>
</compile_context>

<pallas_src>
import functools

import jax
import jax.numpy as jnp
from jax import lax
from jax.experimental import pallas as pl
from jax.experimental.pallas import tpu as pltpu

EPS = 1e-5
NEG_SLOPE = 0.2
_MiB = 1024 * 1024


def _roll(x, shift):
    """Circular roll along the last (lane) axis; shift normalized to [0, n)."""
    n = x.shape[-1]
    return pltpu.roll(x, shift % n, x.ndim - 1)


def _shift_w(x, dx, is_w_lo, is_w_hi):
    """x[c, h*W+w] -> x[c, h, reflect_w(w + dx - 1)] on a flattened (C, H*W) tile."""
    if dx == 1:
        return x
    if dx == 0:                                   # w' = w-1; at w==0 reflect to col 1
        return jnp.where(is_w_lo, _roll(x, -1), _roll(x, 1))
    return jnp.where(is_w_hi, _roll(x, 1), _roll(x, -1))     # dx == 2


def _shift_h(x, dy, W, is_h_lo, is_h_hi):
    """x[c, h*W+w] -> x[c, reflect_h(h + dy - 1), w] on a flattened (C, H*W) tile."""
    if dy == 1:
        return x
    if dy == 0:                                   # h' = h-1; at h==0 reflect to row 1
        return jnp.where(is_h_lo, _roll(x, -W), _roll(x, W))
    return jnp.where(is_h_hi, _roll(x, W), _roll(x, -W))     # dy == 2


def _conv3x3_reflect(x, w_ref, W, masks, cdtype):
    """3x3 reflection-padded conv on a lane-dense (C, H*W) tile.

    x:     (Cin, H*W) f32 activation.
    w_ref: (9, Cout, Cin) Ref in the matmul compute dtype, tap t = dy*3 + dx.
    Returns an f32 (Cout, H*W) accumulator (9 accumulated MXU matmuls).
    """
    is_w_lo, is_w_hi, is_h_lo, is_h_hi = masks
    acc = jnp.zeros((w_ref.shape[1], x.shape[-1]), jnp.float32)
    for dx in range(3):                                       # static unroll
        xw = _shift_w(x, dx, is_w_lo, is_w_hi)
        taps = [_shift_h(xw, dy, W, is_h_lo, is_h_hi).astype(cdtype)
                for dy in range(3)]
        for dy in range(3):                                   # 3 back-to-back dots
            acc = acc + jnp.dot(w_ref[dy * 3 + dx], taps[dy],
                                preferred_element_type=jnp.float32)
    return acc


def _instance_norm(y):
    """Per-channel InstanceNorm (no affine) on (C, H*W); single fused stats pass."""
    inv_n = 1.0 / y.shape[-1]
    s = jnp.sum(y, axis=-1, keepdims=True)
    sq = jnp.sum(y * y, axis=-1, keepdims=True)
    m = s * inv_n
    var = jnp.maximum(sq * inv_n - m * m, 0.0)                # clamp: rsqrt NaN guard
    return (y - m) * lax.rsqrt(var + EPS)


def _residual_block_kernel(x_ref, w1_ref, w2_ref, o_ref, *, H, W):
    HW = H * W
    cdtype = w1_ref.dtype

    # Reflection boundary masks, computed once and broadcast inside jnp.where.
    lane = lax.broadcasted_iota(jnp.int32, (1, HW), 1)
    col = lane % W
    masks = (col == 0, col == W - 1, lane < W, lane >= (H - 1) * W)

    x_in = x_ref[...]                                         # (C, H*W)
    x32 = x_in.astype(jnp.float32)

    # conv1 -> InstanceNorm -> LeakyReLU(0.2)
    y = _conv3x3_reflect(x32, w1_ref, W, masks, cdtype)
    y = _instance_norm(y)
    y = jnp.maximum(y, NEG_SLOPE * y)

    # conv2 -> InstanceNorm  (reflection pad folded into the roll/mask taps)
    y = _conv3x3_reflect(y, w2_ref, W, masks, cdtype)
    y = _instance_norm(y)

    # Residual add in f32, lane-dense unmasked store.
    o_ref[...] = (x32 + y).astype(o_ref.dtype)


def residual_block(x, w1, w2, *, compute_dtype=jnp.bfloat16):
    """x: (N, C, H, W); w1/w2: (C, C, 3, 3). Conv biases cancel under InstanceNorm."""
    N, C, H, W = x.shape
    HW = H * W

    # Lane-dense layout for the whole kernel: (N, C, H*W).
    x_flat = x.reshape(N, C, HW)

    # (Cout, Cin, 3, 3) -> (9, Cout, Cin), tap t = dy*3 + dx, in the matmul dtype.
    w1_t = jnp.transpose(w1, (2, 3, 0, 1)).reshape(9, C, C).astype(compute_dtype)
    w2_t = jnp.transpose(w2, (2, 3, 0, 1)).reshape(9, C, C).astype(compute_dtype)

    # Explicit VMEM budget from the real block sizes: double-buffered x/out blocks,
    # both weight tensors, and the in-kernel f32 temporaries (acc, taps, x32, ...).
    io_bytes = C * HW * x.dtype.itemsize
    w_bytes = 2 * 9 * C * C * jnp.dtype(compute_dtype).itemsize
    tmp_bytes = 6 * C * HW * 4
    est = int(1.5 * (4 * io_bytes + 2 * w_bytes + tmp_bytes))
    # Only override the default scoped-VMEM limit when the working set needs it.
    vmem_limit = min(est, 64 * _MiB) if est > 16 * _MiB else None

    kernel = functools.partial(_residual_block_kernel, H=H, W=W)

    out_flat = pl.pallas_call(
        kernel,
        out_shape=jax.ShapeDtypeStruct((N, C, HW), x.dtype),
        grid=(N,),
        in_specs=[
            pl.BlockSpec((None, C, HW), lambda n: (n, 0, 0)),
            pl.BlockSpec((9, C, C), lambda n: (0, 0, 0)),
            pl.BlockSpec((9, C, C), lambda n: (0, 0, 0)),
        ],
        out_specs=pl.BlockSpec((None, C, HW), lambda n: (n, 0, 0)),
        compiler_params=pltpu.CompilerParams(
            dimension_semantics=("parallel",),
            vmem_limit_bytes=vmem_limit),
    )(x_flat, w1_t, w2_t)

    return out_flat.reshape(N, C, H, W)


def ref_forward(x, w1, b1, w2, b2):
    """Pure-JAX reference (includes conv biases; InstanceNorm cancels them exactly)."""
    def conv(y, w, b):
        yp = jnp.pad(y, ((0, 0), (0, 0), (1, 1), (1, 1)), mode="reflect")
        out = lax.conv_general_dilated(
            yp, w, window_strides=(1, 1), padding="VALID",
            dimension_numbers=("NCHW", "OIHW", "NCHW"),
            precision=lax.Precision.HIGHEST)
        return out + b.reshape(1, -1, 1, 1)

    def inorm(y):
        m = y.mean(axis=(2, 3), keepdims=True)
        v = ((y - m) ** 2).mean(axis=(2, 3), keepdims=True)
        return (y - m) / jnp.sqrt(v + EPS)

    y = conv(x, w1, b1)
    y = inorm(y)
    y = jnp.where(y > 0, y, NEG_SLOPE * y)
    y = conv(y, w2, b2)
    y = inorm(y)
    return x + y


if __name__ == "__main__":
    N, C, H, W = 2, 4, 16, 16
    key = jax.random.PRNGKey(0)
    kx, kw1, kb1, kw2, kb2 = jax.random.split(key, 5)

    x = jax.random.normal(kx, (N, C, H, W), jnp.float32)

    # Conv2d-style init: U(-k, k), k = 1/sqrt(fan_in), fan_in = C*3*3.
    fan_in = C * 3 * 3
    k = 1.0 / float(fan_in) ** 0.5
    w1 = jax.random.uniform(kw1, (C, C, 3, 3), jnp.float32, -k, k)
    b1 = jax.random.uniform(kb1, (C,), jnp.float32, -k, k)
    w2 = jax.random.uniform(kw2, (C, C, 3, 3), jnp.float32, -k, k)
    b2 = jax.random.uniform(kb2, (C,), jnp.float32, -k, k)

    expected = jax.block_until_ready(ref_forward(x, w1, b1, w2, b2))

    # Exactness check: f32 matmul operands.
    out_f32 = jax.block_until_ready(
        residual_block(x, w1, w2, compute_dtype=jnp.float32))
    assert out_f32.shape == (N, C, H, W)
    assert jnp.allclose(out_f32, expected, atol=5e-4, rtol=5e-4), \
        "f32-path mismatch vs reference"

    # Production path: bf16 matmul operands, f32 accumulation / InstanceNorm.
    out_bf16 = jax.block_until_ready(
        residual_block(x, w1, w2, compute_dtype=jnp.bfloat16))
    assert out_bf16.shape == (N, C, H, W)
    assert jnp.allclose(out_bf16, expected, atol=1e-1, rtol=1e-1), \
        "bf16-path mismatch vs reference"

    print("KERNEL_OK")
</pallas_src>

<mosaic_0001>
module attributes {stable_mosaic.version = 11 : i64} {
  func.func @_residual_block_kernel(%arg0: i32, %arg1: memref<1x4x256xf32, #tpu.memory_space<vmem>>, %arg2: memref<9x4x4xf32, #tpu.memory_space<vmem>>, %arg3: memref<9x4x4xf32, #tpu.memory_space<vmem>>, %arg4: memref<1x4x256xf32, #tpu.memory_space<vmem>>) attributes {dimension_semantics = [#tpu.dimension_semantics<parallel>], iteration_bounds = array<i64: 2>, scalar_prefetch = 0 : i64, scratch_operands = 0 : i64, tpu.core_type = #tpu.core_type<tc>, window_params = [{transform_indices = @transform_0, window_bounds = array<i64: 1, 4, 256>}, {pipeline_mode = #tpu.pipeline_mode<synchronous>, transform_indices = @transform_1, window_bounds = array<i64: 9, 4, 4>}, {pipeline_mode = #tpu.pipeline_mode<synchronous>, transform_indices = @transform_2, window_bounds = array<i64: 9, 4, 4>}, {transform_indices = @transform_3, window_bounds = array<i64: 1, 4, 256>}]} {
    %0 = tpu.iota {dimensions = array<i32: 1>} : vector<1x256xi32>
    %c16_i32 = arith.constant 16 : i32
    %c0_i32 = arith.constant 0 : i32
    %1 = arith.cmpi eq, %c16_i32, %c0_i32 : i32
    %c1_i32 = arith.constant 1 : i32
    %2 = arith.select %1, %c1_i32, %c16_i32 : i32
    %3 = vector.broadcast %2 : i32 to vector<1x256xi32>
    %4 = arith.remsi %0, %3 : vector<1x256xi32>
    %c0_i32_0 = arith.constant 0 : i32
    %5 = vector.broadcast %c0_i32_0 : i32 to vector<1x256xi32>
    %6 = arith.cmpi ne, %4, %5 : vector<1x256xi32>
    %c0_i32_1 = arith.constant 0 : i32
    %7 = vector.broadcast %c0_i32_1 : i32 to vector<1x256xi32>
    %8 = arith.cmpi slt, %4, %7 : vector<1x256xi32>
    %c0_i32_2 = arith.constant 0 : i32
    %9 = arith.cmpi slt, %2, %c0_i32_2 : i32
    %10 = vector.broadcast %9 : i1 to vector<1x256xi1>
    %11 = vector.broadcast %10 : vector<1x256xi1> to vector<1x256xi1>
    %12 = arith.xori %8, %11 : vector<1x256xi1>
    %13 = arith.andi %12, %6 : vector<1x256xi1>
    %14 = vector.broadcast %2 : i32 to vector<1x256xi32>
    %15 = arith.addi %4, %14 : vector<1x256xi32>
    %16 = arith.select %13, %15, %4 : vector<1x256xi1>, vector<1x256xi32>
    %c0_i32_3 = arith.constant 0 : i32
    %17 = vector.broadcast %c0_i32_3 : i32 to vector<1x256xi32>
    %18 = arith.cmpi eq, %16, %17 : vector<1x256xi32>
    %c15_i32 = arith.constant 15 : i32
    %19 = vector.broadcast %c15_i32 : i32 to vector<1x256xi32>
    %20 = arith.cmpi eq, %16, %19 : vector<1x256xi32>
    %c16_i32_4 = arith.constant 16 : i32
    %21 = vector.broadcast %c16_i32_4 : i32 to vector<1x256xi32>
    %22 = arith.cmpi slt, %0, %21 : vector<1x256xi32>
    %c240_i32 = arith.constant 240 : i32
    %23 = vector.broadcast %c240_i32 : i32 to vector<1x256xi32>
    %24 = arith.cmpi sge, %0, %23 : vector<1x256xi32>
    %c0 = arith.constant 0 : index
    %c0_5 = arith.constant 0 : index
    %c0_6 = arith.constant 0 : index
    %25 = vector.load %arg1[%c0, %c0_5, %c0_6] : memref<1x4x256xf32, #tpu.memory_space<vmem>>, vector<1x4x256xf32>
    %26 = vector.shape_cast %25 : vector<1x4x256xf32> to vector<4x256xf32>
    %cst = arith.constant 0.000000e+00 : f32
    %27 = vector.broadcast %cst : f32 to vector<4x256xf32>
    %c255_i32 = arith.constant 255 : i32
    %28 = tpu.dynamic_rotate %26 by %c255_i32 dim 1 : vector<4x256xf32>, i32 -> vector<4x256xf32>
    %c1_i32_7 = arith.constant 1 : i32
    %29 = tpu.dynamic_rotate %26 by %c1_i32_7 dim 1 : vector<4x256xf32>, i32 -> vector<4x256xf32>
    %30 = vector.shape_cast %18 : vector<1x256xi1> to vector<1x256xi1>
    %31 = vector.broadcast %30 : vector<1x256xi1> to vector<4x256xi1>
    %32 = arith.select %31, %28, %29 : vector<4x256xi1>, vector<4x256xf32>
    %c240_i32_8 = arith.constant 240 : i32
    %33 = tpu.dynamic_rotate %32 by %c240_i32_8 dim 1 : vector<4x256xf32>, i32 -> vector<4x256xf32>
    %c16_i32_9 = arith.constant 16 : i32
    %34 = tpu.dynamic_rotate %32 by %c16_i32_9 dim 1 : vector<4x256xf32>, i32 -> vector<4x256xf32>
    %35 = vector.shape_cast %22 : vector<1x256xi1> to vector<1x256xi1>
    %36 = vector.broadcast %35 : vector<1x256xi1> to vector<4x256xi1>
    %37 = arith.select %36, %33, %34 : vector<4x256xi1>, vector<4x256xf32>
    %c16_i32_10 = arith.constant 16 : i32
    %38 = tpu.dynamic_rotate %32 by %c16_i32_10 dim 1 : vector<4x256xf32>, i32 -> vector<4x256xf32>
    %c240_i32_11 = arith.constant 240 : i32
    %39 = tpu.dynamic_rotate %32 by %c240_i32_11 dim 1 : vector<4x256xf32>, i32 -> vector<4x256xf32>
    %40 = vector.shape_cast %24 : vector<1x256xi1> to vector<1x256xi1>
    %41 = vector.broadcast %40 : vector<1x256xi1> to vector<4x256xi1>
    %42 = arith.select %41, %38, %39 : vector<4x256xi1>, vector<4x256xf32>
    %c0_12 = arith.constant 0 : index
    %c0_13 = arith.constant 0 : index
    %c0_14 = arith.constant 0 : index
    %43 = vector.load %arg2[%c0_12, %c0_13, %c0_14] : memref<9x4x4xf32, #tpu.memory_space<vmem>>, vector<1x4x4xf32>
    %44 = vector.shape_cast %43 : vector<1x4x4xf32> to vector<4x4xf32>
    %cst_15 = arith.constant dense<0.000000e+00> : vector<4x256xf32>
    %45 = tpu.matmul %44, %37, %cst_15 {dimension_numbers = #tpu.dot_dimension_numbers<[1], [0], [0], [1], [0, 0, 1, 1], [], []>} : vector<4x4xf32>, vector<4x256xf32>, vector<4x256xf32> -> vector<4x256xf32>
    %46 = arith.addf %27, %45 : vector<4x256xf32>
    %c3 = arith.constant 3 : index
    %c0_16 = arith.constant 0 : index
    %c0_17 = arith.constant 0 : index
    %47 = vector.load %arg2[%c3, %c0_16, %c0_17] : memref<9x4x4xf32, #tpu.memory_space<vmem>>, vector<1x4x4xf32>
    %48 = vector.shape_cast %47 : vector<1x4x4xf32> to vector<4x4xf32>
    %cst_18 = arith.constant dense<0.000000e+00> : vector<4x256xf32>
    %49 = tpu.matmul %48, %32, %cst_18 {dimension_numbers = #tpu.dot_dimension_numbers<[1], [0], [0], [1], [0, 0, 1, 1], [], []>} : vector<4x4xf32>, vector<4x256xf32>, vector<4x256xf32> -> vector<4x256xf32>
    %50 = arith.addf %46, %49 : vector<4x256xf32>
    %c6 = arith.constant 6 : index
    %c0_19 = arith.constant 0 : index
    %c0_20 = arith.constant 0 : index
    %51 = vector.load %arg2[%c6, %c0_19, %c0_20] : memref<9x4x4xf32, #tpu.memory_space<vmem>>, vector<1x4x4xf32>
    %52 = vector.shape_cast %51 : vector<1x4x4xf32> to vector<4x4xf32>
    %cst_21 = arith.constant dense<0.000000e+00> : vector<4x256xf32>
    %53 = tpu.matmul %52, %42, %cst_21 {dimension_numbers = #tpu.dot_dimension_numbers<[1], [0], [0], [1], [0, 0, 1, 1], [], []>} : vector<4x4xf32>, vector<4x256xf32>, vector<4x256xf32> -> vector<4x256xf32>
    %54 = arith.addf %50, %53 : vector<4x256xf32>
    %c240_i32_22 = arith.constant 240 : i32
    %55 = tpu.dynamic_rotate %26 by %c240_i32_22 dim 1 : vector<4x256xf32>, i32 -> vector<4x256xf32>
    %c16_i32_23 = arith.constant 16 : i32
    %56 = tpu.dynamic_rotate %26 by %c16_i32_23 dim 1 : vector<4x256xf32>, i32 -> vector<4x256xf32>
    %57 = vector.shape_cast %22 : vector<1x256xi1> to vector<1x256xi1>
    %58 = vector.broadcast %57 : vector<1x256xi1> to vector<4x256xi1>
    %59 = arith.select %58, %55, %56 : vector<4x256xi1>, vector<4x256xf32>
    %c16_i32_24 = arith.constant 16 : i32
    %60 = tpu.dynamic_rotate %26 by %c16_i32_24 dim 1 : vector<4x256xf32>, i32 -> vector<4x256xf32>
    %c240_i32_25 = arith.constant 240 : i32
    %61 = tpu.dynamic_rotate %26 by %c240_i32_25 dim 1 : vector<4x256xf32>, i32 -> vector<4x256xf32>
    %62 = vector.shape_cast %24 : vector<1x256xi1> to vector<1x256xi1>
    %63 = vector.broadcast %62 : vector<1x256xi1> to vector<4x256xi1>
    %64 = arith.select %63, %60, %61 : vector<4x256xi1>, vector<4x256xf32>
    %c1 = arith.constant 1 : index
    %c0_26 = arith.constant 0 : index
    %c0_27 = arith.constant 0 : index
    %65 = vector.load %arg2[%c1, %c0_26, %c0_27] : memref<9x4x4xf32, #tpu.memory_space<vmem>>, vector<1x4x4xf32>
    %66 = vector.shape_cast %65 : vector<1x4x4xf32> to vector<4x4xf32>
    %cst_28 = arith.constant dense<0.000000e+00> : vector<4x256xf32>
    %67 = tpu.matmul %66, %59, %cst_28 {dimension_numbers = #tpu.dot_dimension_numbers<[1], [0], [0], [1], [0, 0, 1, 1], [], []>} : vector<4x4xf32>, vector<4x256xf32>, vector<4x256xf32> -> vector<4x256xf32>
    %68 = arith.addf %54, %67 : vector<4x256xf32>
    %c4 = arith.constant 4 : index
    %c0_29 = arith.constant 0 : index
    %c0_30 = arith.constant 0 : index
    %69 = vector.load %arg2[%c4, %c0_29, %c0_30] : memref<9x4x4xf32, #tpu.memory_space<vmem>>, vector<1x4x4xf32>
    %70 = vector.shape_cast %69 : vector<1x4x4xf32> to vector<4x4xf32>
    %cst_31 = arith.constant dense<0.000000e+00> : vector<4x256xf32>
    %71 = tpu.matmul %70, %26, %cst_31 {dimension_numbers = #tpu.dot_dimension_numbers<[1], [0], [0], [1], [0, 0, 1, 1], [], []>} : vector<4x4xf32>, vector<4x256xf32>, vector<4x256xf32> -> vector<4x256xf32>
    %72 = arith.addf %68, %71 : vector<4x256xf32>
    %c7 = arith.constant 7 : index
    %c0_32 = arith.constant 0 : index
    %c0_33 = arith.constant 0 : index
    %73 = vector.load %arg2[%c7, %c0_32, %c0_33] : memref<9x4x4xf32, #tpu.memory_space<vmem>>, vector<1x4x4xf32>
    %74 = vector.shape_cast %73 : vector<1x4x4xf32> to vector<4x4xf32>
    %cst_34 = arith.constant dense<0.000000e+00> : vector<4x256xf32>
    %75 = tpu.matmul %74, %64, %cst_34 {dimension_numbers = #tpu.dot_dimension_numbers<[1], [0], [0], [1], [0, 0, 1, 1], [], []>} : vector<4x4xf32>, vector<4x256xf32>, vector<4x256xf32> -> vector<4x256xf32>
    %76 = arith.addf %72, %75 : vector<4x256xf32>
    %c1_i32_35 = arith.constant 1 : i32
    %77 = tpu.dynamic_rotate %26 by %c1_i32_35 dim 1 : vector<4x256xf32>, i32 -> vector<4x256xf32>
    %c255_i32_36 = arith.constant 255 : i32
    %78 = tpu.dynamic_rotate %26 by %c255_i32_36 dim 1 : vector<4x256xf32>, i32 -> vector<4x256xf32>
    %79 = vector.shape_cast %20 : vector<1x256xi1> to vector<1x256xi1>
    %80 = vector.broadcast %79 : vector<1x256xi1> to vector<4x256xi1>
    %81 = arith.select %80, %77, %78 : vector<4x256xi1>, vector<4x256xf32>
    %c240_i32_37 = arith.constant 240 : i32
    %82 = tpu.dynamic_rotate %81 by %c240_i32_37 dim 1 : vector<4x256xf32>, i32 -> vector<4x256xf32>
    %c16_i32_38 = arith.constant 16 : i32
    %83 = tpu.dynamic_rotate %81 by %c16_i32_38 dim 1 : vector<4x256xf32>, i32 -> vector<4x256xf32>
    %84 = vector.shape_cast %22 : vector<1x256xi1> to vector<1x256xi1>
    %85 = vector.broadcast %84 : vector<1x256xi1> to vector<4x256xi1>
    %86 = arith.select %85, %82, %83 : vector<4x256xi1>, vector<4x256xf32>
    %c16_i32_39 = arith.constant 16 : i32
    %87 = tpu.dynamic_rotate %81 by %c16_i32_39 dim 1 : vector<4x256xf32>, i32 -> vector<4x256xf32>
    %c240_i32_40 = arith.constant 240 : i32
    %88 = tpu.dynamic_rotate %81 by %c240_i32_40 dim 1 : vector<4x256xf32>, i32 -> vector<4x256xf32>
    %89 = vector.shape_cast %24 : vector<1x256xi1> to vector<1x256xi1>
    %90 = vector.broadcast %89 : vector<1x256xi1> to vector<4x256xi1>
    %91 = arith.select %90, %87, %88 : vector<4x256xi1>, vector<4x256xf32>
    %c2 = arith.constant 2 : index
    %c0_41 = arith.constant 0 : index
    %c0_42 = arith.constant 0 : index
    %92 = vector.load %arg2[%c2, %c0_41, %c0_42] : memref<9x4x4xf32, #tpu.memory_space<vmem>>, vector<1x4x4xf32>
    %93 = vector.shape_cast %92 : vector<1x4x4xf32> to vector<4x4xf32>
    %cst_43 = arith.constant dense<0.000000e+00> : vector<4x256xf32>
    %94 = tpu.matmul %93, %86, %cst_43 {dimension_numbers = #tpu.dot_dimension_numbers<[1], [0], [0], [1], [0, 0, 1, 1], [], []>} : vector<4x4xf32>, vector<4x256xf32>, vector<4x256xf32> -> vector<4x256xf32>
    %95 = arith.addf %76, %94 : vector<4x256xf32>
    %c5 = arith.constant 5 : index
    %c0_44 = arith.constant 0 : index
    %c0_45 = arith.constant 0 : index
    %96 = vector.load %arg2[%c5, %c0_44, %c0_45] : memref<9x4x4xf32, #tpu.memory_space<vmem>>, vector<1x4x4xf32>
    %97 = vector.shape_cast %96 : vector<1x4x4xf32> to vector<4x4xf32>
    %cst_46 = arith.constant dense<0.000000e+00> : vector<4x256xf32>
    %98 = tpu.matmul %97, %81, %cst_46 {dimension_numbers = #tpu.dot_dimension_numbers<[1], [0], [0], [1], [0, 0, 1, 1], [], []>} : vector<4x4xf32>, vector<4x256xf32>, vector<4x256xf32> -> vector<4x256xf32>
    %99 = arith.addf %95, %98 : vector<4x256xf32>
    %c8 = arith.constant 8 : index
    %c0_47 = arith.constant 0 : index
    %c0_48 = arith.constant 0 : index
    %100 = vector.load %arg2[%c8, %c0_47, %c0_48] : memref<9x4x4xf32, #tpu.memory_space<vmem>>, vector<1x4x4xf32>
    %101 = vector.shape_cast %100 : vector<1x4x4xf32> to vector<4x4xf32>
    %cst_49 = arith.constant dense<0.000000e+00> : vector<4x256xf32>
    %102 = tpu.matmul %101, %91, %cst_49 {dimension_numbers = #tpu.dot_dimension_numbers<[1], [0], [0], [1], [0, 0, 1, 1], [], []>} : vector<4x4xf32>, vector<4x256xf32>, vector<4x256xf32> -> vector<4x256xf32>
    %103 = arith.addf %99, %102 : vector<4x256xf32>
    %cst_50 = arith.constant dense<0.000000e+00> : vector<4xf32>
    %104 = vector.multi_reduction <add>, %103, %cst_50 [1] : vector<4x256xf32> to vector<4xf32>
    %105 = vector.shape_cast %104 : vector<4xf32> to vector<4x1xf32>
    %106 = arith.mulf %103, %103 : vector<4x256xf32>
    %cst_51 = arith.constant dense<0.000000e+00> : vector<4xf32>
    %107 = vector.multi_reduction <add>, %106, %cst_51 [1] : vector<4x256xf32> to vector<4xf32>
    %108 = vector.shape_cast %107 : vector<4xf32> to vector<4x1xf32>
    %cst_52 = arith.constant 3.906250e-03 : f32
    %109 = vector.broadcast %cst_52 : f32 to vector<4x1xf32>
    %110 = arith.mulf %105, %109 : vector<4x1xf32>
    %cst_53 = arith.constant 3.906250e-03 : f32
    %111 = vector.broadcast %cst_53 : f32 to vector<4x1xf32>
    %112 = arith.mulf %108, %111 : vector<4x1xf32>
    %113 = arith.mulf %110, %110 : vector<4x1xf32>
    %114 = arith.subf %112, %113 : vector<4x1xf32>
    %cst_54 = arith.constant 0.000000e+00 : f32
    %115 = vector.broadcast %cst_54 : f32 to vector<4x1xf32>
    %116 = arith.maximumf %114, %115 : vector<4x1xf32>
    %117 = vector.broadcast %110 : vector<4x1xf32> to vector<4x256xf32>
    %118 = arith.subf %103, %117 : vector<4x256xf32>
    %cst_55 = arith.constant 9.99999974E-6 : f32
    %119 = vector.broadcast %cst_55 : f32 to vector<4x1xf32>
    %120 = arith.addf %116, %119 : vector<4x1xf32>
    %121 = math.rsqrt %120 : vector<4x1xf32>
    %122 = vector.broadcast %121 : vector<4x1xf32> to vector<4x256xf32>
    %123 = arith.mulf %118, %122 : vector<4x256xf32>
    %cst_56 = arith.constant 2.000000e-01 : f32
    %124 = vector.broadcast %cst_56 : f32 to vector<4x256xf32>
    %125 = arith.mulf %124, %123 : vector<4x256xf32>
    %126 = arith.maximumf %123, %125 : vector<4x256xf32>
    %cst_57 = arith.constant 0.000000e+00 : f32
    %127 = vector.broadcast %cst_57 : f32 to vector<4x256xf32>
    %c255_i32_58 = arith.constant 255 : i32
    %128 = tpu.dynamic_rotate %126 by %c255_i32_58 dim 1 : vector<4x256xf32>, i32 -> vector<4x256xf32>
    %c1_i32_59 = arith.constant 1 : i32
    %129 = tpu.dynamic_rotate %126 by %c1_i32_59 dim 1 : vector<4x256xf32>, i32 -> vector<4x256xf32>
    %130 = vector.shape_cast %18 : vector<1x256xi1> to vector<1x256xi1>
    %131 = vector.broadcast %130 : vector<1x256xi1> to vector<4x256xi1>
    %132 = arith.select %131, %128, %129 : vector<4x256xi1>, vector<4x256xf32>
    %c240_i32_60 = arith.constant 240 : i32
    %133 = tpu.dynamic_rotate %132 by %c240_i32_60 dim 1 : vector<4x256xf32>, i32 -> vector<4x256xf32>
    %c16_i32_61 = arith.constant 16 : i32
    %134 = tpu.dynamic_rotate %132 by %c16_i32_61 dim 1 : vector<4x256xf32>, i32 -> vector<4x256xf32>
    %135 = vector.shape_cast %22 : vector<1x256xi1> to vector<1x256xi1>
    %136 = vector.broadcast %135 : vector<1x256xi1> to vector<4x256xi1>
    %137 = arith.select %136, %133, %134 : vector<4x256xi1>, vector<4x256xf32>
    %c16_i32_62 = arith.constant 16 : i32
    %138 = tpu.dynamic_rotate %132 by %c16_i32_62 dim 1 : vector<4x256xf32>, i32 -> vector<4x256xf32>
    %c240_i32_63 = arith.constant 240 : i32
    %139 = tpu.dynamic_rotate %132 by %c240_i32_63 dim 1 : vector<4x256xf32>, i32 -> vector<4x256xf32>
    %140 = vector.shape_cast %24 : vector<1x256xi1> to vector<1x256xi1>
    %141 = vector.broadcast %140 : vector<1x256xi1> to vector<4x256xi1>
    %142 = arith.select %141, %138, %139 : vector<4x256xi1>, vector<4x256xf32>
    %c0_64 = arith.constant 0 : index
    %c0_65 = arith.constant 0 : index
    %c0_66 = arith.constant 0 : index
    %143 = vector.load %arg3[%c0_64, %c0_65, %c0_66] : memref<9x4x4xf32, #tpu.memory_space<vmem>>, vector<1x4x4xf32>
    %144 = vector.shape_cast %143 : vector<1x4x4xf32> to vector<4x4xf32>
    %cst_67 = arith.constant dense<0.000000e+00> : vector<4x256xf32>
    %145 = tpu.matmul %144, %137, %cst_67 {dimension_numbers = #tpu.dot_dimension_numbers<[1], [0], [0], [1], [0, 0, 1, 1], [], []>} : vector<4x4xf32>, vector<4x256xf32>, vector<4x256xf32> -> vector<4x256xf32>
    %146 = arith.addf %127, %145 : vector<4x256xf32>
    %c3_68 = arith.constant 3 : index
    %c0_69 = arith.constant 0 : index
    %c0_70 = arith.constant 0 : index
    %147 = vector.load %arg3[%c3_68, %c0_69, %c0_70] : memref<9x4x4xf32, #tpu.memory_space<vmem>>, vector<1x4x4xf32>
    %148 = vector.shape_cast %147 : vector<1x4x4xf32> to vector<4x4xf32>
    %cst_71 = arith.constant dense<0.000000e+00> : vector<4x256xf32>
    %149 = tpu.matmul %148, %132, %cst_71 {dimension_numbers = #tpu.dot_dimension_numbers<[1], [0], [0], [1], [0, 0, 1, 1], [], []>} : vector<4x4xf32>, vector<4x256xf32>, vector<4x256xf32> -> vector<4x256xf32>
    %150 = arith.addf %146, %149 : vector<4x256xf32>
    %c6_72 = arith.constant 6 : index
    %c0_73 = arith.constant 0 : index
    %c0_74 = arith.constant 0 : index
    %151 = vector.load %arg3[%c6_72, %c0_73, %c0_74] : memref<9x4x4xf32, #tpu.memory_space<vmem>>, vector<1x4x4xf32>
    %152 = vector.shape_cast %151 : vector<1x4x4xf32> to vector<4x4xf32>
    %cst_75 = arith.constant dense<0.000000e+00> : vector<4x256xf32>
    %153 = tpu.matmul %152, %142, %cst_75 {dimension_numbers = #tpu.dot_dimension_numbers<[1], [0], [0], [1], [0, 0, 1, 1], [], []>} : vector<4x4xf32>, vector<4x256xf32>, vector<4x256xf32> -> vector<4x256xf32>
    %154 = arith.addf %150, %153 : vector<4x256xf32>
    %c240_i32_76 = arith.constant 240 : i32
    %155 = tpu.dynamic_rotate %126 by %c240_i32_76 dim 1 : vector<4x256xf32>, i32 -> vector<4x256xf32>
    %c16_i32_77 = arith.constant 16 : i32
    %156 = tpu.dynamic_rotate %126 by %c16_i32_77 dim 1 : vector<4x256xf32>, i32 -> vector<4x256xf32>
    %157 = vector.shape_cast %22 : vector<1x256xi1> to vector<1x256xi1>
    %158 = vector.broadcast %157 : vector<1x256xi1> to vector<4x256xi1>
    %159 = arith.select %158, %155, %156 : vector<4x256xi1>, vector<4x256xf32>
    %c16_i32_78 = arith.constant 16 : i32
    %160 = tpu.dynamic_rotate %126 by %c16_i32_78 dim 1 : vector<4x256xf32>, i32 -> vector<4x256xf32>
    %c240_i32_79 = arith.constant 240 : i32
    %161 = tpu.dynamic_rotate %126 by %c240_i32_79 dim 1 : vector<4x256xf32>, i32 -> vector<4x256xf32>
    %162 = vector.shape_cast %24 : vector<1x256xi1> to vector<1x256xi1>
    %163 = vector.broadcast %162 : vector<1x256xi1> to vector<4x256xi1>
    %164 = arith.select %163, %160, %161 : vector<4x256xi1>, vector<4x256xf32>
    %c1_80 = arith.constant 1 : index
    %c0_81 = arith.constant 0 : index
    %c0_82 = arith.constant 0 : index
    %165 = vector.load %arg3[%c1_80, %c0_81, %c0_82] : memref<9x4x4xf32, #tpu.memory_space<vmem>>, vector<1x4x4xf32>
    %166 = vector.shape_cast %165 : vector<1x4x4xf32> to vector<4x4xf32>
    %cst_83 = arith.constant dense<0.000000e+00> : vector<4x256xf32>
    %167 = tpu.matmul %166, %159, %cst_83 {dimension_numbers = #tpu.dot_dimension_numbers<[1], [0], [0], [1], [0, 0, 1, 1], [], []>} : vector<4x4xf32>, vector<4x256xf32>, vector<4x256xf32> -> vector<4x256xf32>
    %168 = arith.addf %154, %167 : vector<4x256xf32>
    %c4_84 = arith.constant 4 : index
    %c0_85 = arith.constant 0 : index
    %c0_86 = arith.constant 0 : index
    %169 = vector.load %arg3[%c4_84, %c0_85, %c0_86] : memref<9x4x4xf32, #tpu.memory_space<vmem>>, vector<1x4x4xf32>
    %170 = vector.shape_cast %169 : vector<1x4x4xf32> to vector<4x4xf32>
    %cst_87 = arith.constant dense<0.000000e+00> : vector<4x256xf32>
    %171 = tpu.matmul %170, %126, %cst_87 {dimension_numbers = #tpu.dot_dimension_numbers<[1], [0], [0], [1], [0, 0, 1, 1], [], []>} : vector<4x4xf32>, vector<4x256xf32>, vector<4x256xf32> -> vector<4x256xf32>
    %172 = arith.addf %168, %171 : vector<4x256xf32>
    %c7_88 = arith.constant 7 : index
    %c0_89 = arith.constant 0 : index
    %c0_90 = arith.constant 0 : index
    %173 = vector.load %arg3[%c7_88, %c0_89, %c0_90] : memref<9x4x4xf32, #tpu.memory_space<vmem>>, vector<1x4x4xf32>
    %174 = vector.shape_cast %173 : vector<1x4x4xf32> to vector<4x4xf32>
    %cst_91 = arith.constant dense<0.000000e+00> : vector<4x256xf32>
    %175 = tpu.matmul %174, %164, %cst_91 {dimension_numbers = #tpu.dot_dimension_numbers<[1], [0], [0], [1], [0, 0, 1, 1], [], []>} : vector<4x4xf32>, vector<4x256xf32>, vector<4x256xf32> -> vector<4x256xf32>
    %176 = arith.addf %172, %175 : vector<4x256xf32>
    %c1_i32_92 = arith.constant 1 : i32
    %177 = tpu.dynamic_rotate %126 by %c1_i32_92 dim 1 : vector<4x256xf32>, i32 -> vector<4x256xf32>
    %c255_i32_93 = arith.constant 255 : i32
    %178 = tpu.dynamic_rotate %126 by %c255_i32_93 dim 1 : vector<4x256xf32>, i32 -> vector<4x256xf32>
    %179 = vector.shape_cast %20 : vector<1x256xi1> to vector<1x256xi1>
    %180 = vector.broadcast %179 : vector<1x256xi1> to vector<4x256xi1>
    %181 = arith.select %180, %177, %178 : vector<4x256xi1>, vector<4x256xf32>
    %c240_i32_94 = arith.constant 240 : i32
    %182 = tpu.dynamic_rotate %181 by %c240_i32_94 dim 1 : vector<4x256xf32>, i32 -> vector<4x256xf32>
    %c16_i32_95 = arith.constant 16 : i32
    %183 = tpu.dynamic_rotate %181 by %c16_i32_95 dim 1 : vector<4x256xf32>, i32 -> vector<4x256xf32>
    %184 = vector.shape_cast %22 : vector<1x256xi1> to vector<1x256xi1>
    %185 = vector.broadcast %184 : vector<1x256xi1> to vector<4x256xi1>
    %186 = arith.select %185, %182, %183 : vector<4x256xi1>, vector<4x256xf32>
    %c16_i32_96 = arith.constant 16 : i32
    %187 = tpu.dynamic_rotate %181 by %c16_i32_96 dim 1 : vector<4x256xf32>, i32 -> vector<4x256xf32>
    %c240_i32_97 = arith.constant 240 : i32
    %188 = tpu.dynamic_rotate %181 by %c240_i32_97 dim 1 : vector<4x256xf32>, i32 -> vector<4x256xf32>
    %189 = vector.shape_cast %24 : vector<1x256xi1> to vector<1x256xi1>
    %190 = vector.broadcast %189 : vector<1x256xi1> to vector<4x256xi1>
    %191 = arith.select %190, %187, %188 : vector<4x256xi1>, vector<4x256xf32>
    %c2_98 = arith.constant 2 : index
    %c0_99 = arith.constant 0 : index
    %c0_100 = arith.constant 0 : index
    %192 = vector.load %arg3[%c2_98, %c0_99, %c0_100] : memref<9x4x4xf32, #tpu.memory_space<vmem>>, vector<1x4x4xf32>
    %193 = vector.shape_cast %192 : vector<1x4x4xf32> to vector<4x4xf32>
    %cst_101 = arith.constant dense<0.000000e+00> : vector<4x256xf32>
    %194 = tpu.matmul %193, %186, %cst_101 {dimension_numbers = #tpu.dot_dimension_numbers<[1], [0], [0], [1], [0, 0, 1, 1], [], []>} : vector<4x4xf32>, vector<4x256xf32>, vector<4x256xf32> -> vector<4x256xf32>
    %195 = arith.addf %176, %194 : vector<4x256xf32>
    %c5_102 = arith.constant 5 : index
    %c0_103 = arith.constant 0 : index
    %c0_104 = arith.constant 0 : index
    %196 = vector.load %arg3[%c5_102, %c0_103, %c0_104] : memref<9x4x4xf32, #tpu.memory_space<vmem>>, vector<1x4x4xf32>
    %197 = vector.shape_cast %196 : vector<1x4x4xf32> to vector<4x4xf32>
    %cst_105 = arith.constant dense<0.000000e+00> : vector<4x256xf32>
    %198 = tpu.matmul %197, %181, %cst_105 {dimension_numbers = #tpu.dot_dimension_numbers<[1], [0], [0], [1], [0, 0, 1, 1], [], []>} : vector<4x4xf32>, vector<4x256xf32>, vector<4x256xf32> -> vector<4x256xf32>
    %199 = arith.addf %195, %198 : vector<4x256xf32>
    %c8_106 = arith.constant 8 : index
    %c0_107 = arith.constant 0 : index
    %c0_108 = arith.constant 0 : index
    %200 = vector.load %arg3[%c8_106, %c0_107, %c0_108] : memref<9x4x4xf32, #tpu.memory_space<vmem>>, vector<1x4x4xf32>
    %201 = vector.shape_cast %200 : vector<1x4x4xf32> to vector<4x4xf32>
    %cst_109 = arith.constant dense<0.000000e+00> : vector<4x256xf32>
    %202 = tpu.matmul %201, %191, %cst_109 {dimension_numbers = #tpu.dot_dimension_numbers<[1], [0], [0], [1], [0, 0, 1, 1], [], []>} : vector<4x4xf32>, vector<4x256xf32>, vector<4x256xf32> -> vector<4x256xf32>
    %203 = arith.addf %199, %202 : vector<4x256xf32>
    %cst_110 = arith.constant dense<0.000000e+00> : vector<4xf32>
    %204 = vector.multi_reduction <add>, %203, %cst_110 [1] : vector<4x256xf32> to vector<4xf32>
    %205 = vector.shape_cast %204 : vector<4xf32> to vector<4x1xf32>
    %206 = arith.mulf %203, %203 : vector<4x256xf32>
    %cst_111 = arith.constant dense<0.000000e+00> : vector<4xf32>
    %207 = vector.multi_reduction <add>, %206, %cst_111 [1] : vector<4x256xf32> to vector<4xf32>
    %208 = vector.shape_cast %207 : vector<4xf32> to vector<4x1xf32>
    %cst_112 = arith.constant 3.906250e-03 : f32
    %209 = vector.broadcast %cst_112 : f32 to vector<4x1xf32>
    %210 = arith.mulf %205, %209 : vector<4x1xf32>
    %cst_113 = arith.constant 3.906250e-03 : f32
    %211 = vector.broadcast %cst_113 : f32 to vector<4x1xf32>
    %212 = arith.mulf %208, %211 : vector<4x1xf32>
    %213 = arith.mulf %210, %210 : vector<4x1xf32>
    %214 = arith.subf %212, %213 : vector<4x1xf32>
    %cst_114 = arith.constant 0.000000e+00 : f32
    %215 = vector.broadcast %cst_114 : f32 to vector<4x1xf32>
    %216 = arith.maximumf %214, %215 : vector<4x1xf32>
    %217 = vector.broadcast %210 : vector<4x1xf32> to vector<4x256xf32>
    %218 = arith.subf %203, %217 : vector<4x256xf32>
    %cst_115 = arith.constant 9.99999974E-6 : f32
    %219 = vector.broadcast %cst_115 : f32 to vector<4x1xf32>
    %220 = arith.addf %216, %219 : vector<4x1xf32>
    %221 = math.rsqrt %220 : vector<4x1xf32>
    %222 = vector.broadcast %221 : vector<4x1xf32> to vector<4x256xf32>
    %223 = arith.mulf %218, %222 : vector<4x256xf32>
    %224 = arith.addf %26, %223 : vector<4x256xf32>
    %c0_116 = arith.constant 0 : index
    %c0_117 = arith.constant 0 : index
    %c0_118 = arith.constant 0 : index
    %225 = vector.load %arg4[%c0_116, %c0_117, %c0_118] : memref<1x4x256xf32, #tpu.memory_space<vmem>>, vector<1x4x256xf32>
    %226 = vector.shape_cast %225 : vector<1x4x256xf32> to vector<4x256xf32>
    %227 = vector.shape_cast %224 : vector<4x256xf32> to vector<1x4x256xf32>
    tpu.vector_store %arg4[%c0_116, %c0_117, %c0_118], %227 {strides = array<i32>} : memref<1x4x256xf32, #tpu.memory_space<vmem>>, vector<1x4x256xf32>,
    return
  }
  func.func @transform_0(%arg0: i32) -> (i32, i32, i32) {
    %c0_i32 = arith.constant 0 : i32
    %c0_i32_0 = arith.constant 0 : i32
    %c0_i32_1 = arith.constant 0 : i32
    return %arg0, %c0_i32, %c0_i32_0 : i32, i32, i32
  }
  func.func @transform_1(%arg0: i32) -> (i32, i32, i32) {
    %c0_i32 = arith.constant 0 : i32
    %c0_i32_0 = arith.constant 0 : i32
    %c0_i32_1 = arith.constant 0 : i32
    %c0_i32_2 = arith.constant 0 : i32
    return %c0_i32, %c0_i32_0, %c0_i32_1 : i32, i32, i32
  }
  func.func @transform_2(%arg0: i32) -> (i32, i32, i32) {
    %c0_i32 = arith.constant 0 : i32
    %c0_i32_0 = arith.constant 0 : i32
    %c0_i32_1 = arith.constant 0 : i32
    %c0_i32_2 = arith.constant 0 : i32
    return %c0_i32, %c0_i32_0, %c0_i32_1 : i32, i32, i32
  }
  func.func @transform_3(%arg0: i32) -> (i32, i32, i32) {
    %c0_i32 = arith.constant 0 : i32
    %c0_i32_0 = arith.constant 0 : i32
    %c0_i32_1 = arith.constant 0 : i32
    return %arg0, %c0_i32, %c0_i32_0 : i32, i32, i32
  }
}

</mosaic_0001>

<bundles_post_ra>
// kernel: tpu_custom_call.1
= control target key start
LH: loop header
LB: loop body
LE: loop exit
PB: predicated region body
PF: predicated region fallthrough
CT: control target
= control target key end

     0   :  { %8 = vsyncpa [#allocation3], 0  ;;  %s2617_s0 = inlined_call_operand.vmem [shape: f32[2,4,256], index: 0, kind: input, shape index: {}]   ;;  %s2618_s1 = inlined_call_operand.vmem [shape: f32[9,4,4], index: 1, kind: input, shape index: {}]   ;;  %s2619_s2 = inlined_call_operand.vmem [shape: f32[9,4,4], index: 2, kind: input, shape index: {}]   ;;  %s2620_s3 = inlined_call_operand.hbm [shape: f32[2,4,256], index: 3, kind: output, shape index: {}]  }
   0x1   :  { %10 = vsyncpa [#allocation3 + $0x1], 0  ;;  %s2208_s12 = smov 0   ;;  %s2210_s13 = smov 0  }
   0x2   :  { %s2212_s14 = smov 0   ;;  %s2214_s15 = smov 0  }
   0x3 LB: > { %s2229_s16 = sadd.s32 4294967295, %s2180_s15   ;;  %s1987_s17 = sadd.s32 4294967294, %s2180_s15   ;;  %s2180_s15 = sphi %s2214_s15, %s2634_s15   ;;  %s2176_s14 = sphi %s2212_s14, %s2633_s14   ;;  %s2172_s13 = sphi %s2210_s13, %s2632_s13   ;;  %s2168_s12 = sphi %s2208_s12, %s2631_s12  }
   0x4   : > { %s2233_s18 = sadd.s32 1, %s2180_s15   ;;  %s91_s19 = sadd.s32 1, %s2176_s14 }
   0x5   : > { %s88_s20 = ssub.s32 %s2180_s15, %s2233_s18  ;;  %p101_p0 = scmp.ne.s32.totalorder %s2176_s14, %s2172_s13 }
   0x6   : > { %p89_p1 = scmp.eq.s32.totalorder %s88_s20, 0  ;;  %p102_p2 = scmp.eq.s32.totalorder %s2229_s16, 1 }
   0x7   : > { %p107_p3 = scmp.ne.s32.totalorder %s2172_s13, %s2168_s12  ;;  %p108_p4 = scmp.eq.s32.totalorder %s1987_s17, 1 }
   0x8   : > { %s2244_s21 = scalar_select %p89_p1, %s2176_s14, %s91_s19  }
   0x9   : > { %p2246_p5 = por %p102_p2, %p101_p0  ;;  %p2250_p6 = por %p108_p4, %p107_p3 }
   0xa   : > { %p1990_p7 = scmp.ge.s32.totalorder %s2180_s15, 1  ;;  %p140_p8 = scmp.lt.s32.totalorder %s2180_s15, 3 }
   0xc   : > { %p141_p9 = pnand %p1990_p7, %p140_p8 }
   0xd   : > { %p164_p10 = scmp.lt.s32.totalorder (!%p141_p9), %s2229_s16, 1  ;;  %s2182_s29 = smov (!%p141_p9), 1  }
   0xe   : > { %144 = sbr.rel (%p141_p9) target bundleno = 1292 (0x50c), region = 32  ;;  %s2183_s30 = smov (!%p141_p9), 127  }
   0xf   : > { %s2184_s4 = smov (!%p141_p9), 112   ;;  %s2186_s7 = smov (!%p141_p9), 16  }
  0x13   : > { %s165_s24 = scalar_select %p164_p10, %s2229_s16, 1  ;;  %v169_v2 = vlaneseq  ;;  %v2185_v7 = vmov 0.0   ;;  %vm260_vm4 = vcmask 1043456   ;;  %v1994_v20 = vld [vmem:[%s2618_s1 + $0xc] sm:$0xf]  ;;  %vm256_vm5 = vcmask 31744  }
  0x14   : > { %331 = vmatprep.mubr.f32.mxu0 %v2185_v7  ;;  %411 = vmatprep.mubr.f32.mxu1 %v2185_v7  ;;  %v253_v35 = vld [vmem:[%s2618_s1] sm:$0xf]  ;;  %v2001_v38 = vld [vmem:[%s2618_s1 + $0x18] sm:$0xf]  ;;  %v2005_v45 = vld [vmem:[%s2618_s1 + $0x4] sm:$0xf] }
  0x15   : > { %s2069_s25 = sshll.u32 %s165_s24, 3  ;;  %v2279_v3 = vand.u32 127, %v169_v2  ;;  %v2009_v49 = vld [vmem:[%s2618_s1 + $0x10] sm:$0xf]  ;;  %v2013_v51 = vld [vmem:[%s2618_s1 + $0x1c] sm:$0xf] }
  0x16   : > { %s168_s28 = scalar_lea.vmem %s2617_s0, %s2069_s25  ;;  %v2017_v58 = vld [vmem:[%s2618_s1 + $0x8] sm:$0xf]  ;;  %v2021_v59 = vld [vmem:[%s2618_s1 + $0x14] sm:$0xf]  ;;  %v2025_v62 = vld [vmem:[%s2618_s1 + $0x20] sm:$0xf] }
  0x17   : > { %v2261_v0 = vld [vmem:[%s168_s28] sm:$0xff]  ;;  %v2282_v4 = vadd.s32 128, %v2279_v3  ;;  %v176_v6 = vand.u32 15, %v2279_v3  ;;  %vm219_vm0 = vcmp.lt.s32.totalorder %v2279_v3, 1  ;;  %vm212_vm1 = vcmp.lt.s32.totalorder %v2279_v3, 127  ;;  %s2187_s25 = smov [#allocation2]  }
  0x18   : > { %215 = vrot.lane.b32.xlu1 %v2261_v0, %s2182_s29  ;;  %208 = vrot.lane.b32.xlu0 %v2261_v0, %s2183_s30  ;;  %v2269_v1 = vcombine.high %v2261_v0, %v2261_v0  ;;  %vm200_vm8 = vcmp.lt.s32.totalorder %v2279_v3, 16  ;;  %vm232_vm10 = vcmp.lt.s32.totalorder %v2279_v3, 112  ;;  %v2060_v3 = vld [vmem:[%s2619_s2 + $0x20] sm:$0xf]  ;;  %s2124_s26 = sshll.u32 %s2187_s25, 4  ;;  %s2125_s26 = int_to_ptr.vmem [resolvable:$false] %s2124_s26 }
  0x19   : > { %v183_v5 = vand.u32 15, %v2282_v4  ;;  %vm2294_vm3 = vcmp.eq.s32.totalorder %v176_v6, 0  ;;  %vm2329_vm7 = vcmp.eq.s32.totalorder %v176_v6, 15  ;;  %vm203_vm9 = vcmp.ge.s32.totalorder %v2282_v4, 240 }
  0x1b   : > { %vm2290_vm2 = vcmp.eq.s32.totalorder %v183_v5, 0  ;;  %vm2323_vm6 = vcmp.eq.s32.totalorder %v183_v5, 15 }
  0x1c   : > { %217 = vrot.lane.b32.xlu1 %v2269_v1, %s2182_s29  ;;  %210 = vrot.lane.b32.xlu0 %v2269_v1, %s2183_s30 }
  0x20   : > { %504 = vrot.lane.b32.xlu1 %v2269_v1, %s2184_s4  ;;  %502 = vrot.lane.b32.xlu0 %v2261_v0, %s2184_s4 }
  0x8a   : > { %v216_v8 = vpop.permute.xlu1 %215  ;;  %v209_v9 = vpop.permute.xlu0 %208 }
  0x8e   : > { %v218_v12 = vpop.permute.xlu1 %217  ;;  %v211_v13 = vpop.permute.xlu0 %210 }
  0x8f   : > { %v220_v14 = vsel %vm219_vm0, %v216_v8, %v218_v12  ;;  %v221_v15 = vsel %vm219_vm0, %v218_v12, %v216_v8  ;;  %v213_v16 = vsel %vm212_vm1, %v209_v9, %v211_v13  ;;  %v214_v17 = vsel %vm212_vm1, %v211_v13, %v209_v9 }
  0x90   : > { %v227_v18 = vsel %vm2290_vm2, %v214_v17, %v220_v14  ;;  %v226_v19 = vsel %vm2294_vm3, %v213_v16, %v221_v15  ;;  %v773_v23 = vsel %vm2323_vm6, %v220_v14, %v214_v17  ;;  %v772_v24 = vsel %vm2329_vm7, %v221_v15, %v213_v16 }
  0x91   : > { %230 = vrot.lane.b32.xlu1 %v227_v18, %s2184_s4  ;;  %1995 = vmatprep.subr.msk.mxu0 %vm260_vm4, %v227_v18 }
  0x92   : > { %228 = vrot.lane.b32.xlu0 %v226_v19, %s2184_s4  ;;  %1996 = vmatpush1.msk.msra.mxu0 %vm260_vm4, %v226_v19  ;;  %v505_v25 = vpop.permute.xlu1 %504  ;;  %v503_v26 = vpop.permute.xlu0 %502 }
  0x93   : > { %1997 = vmatmul.mubr.msk.f32.vlgmr.msra.gmra.mxu0 %vm256_vm5, %v1994_v20  ;;  %v506_v40 = vsel %vm232_vm10, %v503_v26, %v505_v25  ;;  %v507_v42 = vsel %vm232_vm10, %v505_v25, %v503_v26 }
  0x94   : > { %493 = vmatprep.mubr.f32.mxu0 %v2185_v7 }
  0x95   : > { %237 = vrot.lane.b32.xlu1 %v227_v18, %s2186_s7 }
  0x96   : > { %235 = vrot.lane.b32.xlu0 %v226_v19, %s2186_s7 }
  0x99   : > { %510 = vrot.lane.b32.xlu1 %v2269_v1, %s2186_s7 }
  0x9a   : > { %508 = vrot.lane.b32.xlu0 %v2261_v0, %s2186_s7 }
  0x9d   : > { %776 = vrot.lane.b32.xlu1 %v773_v23, %s2184_s4 }
  0x9e   : > { %774 = vrot.lane.b32.xlu0 %v772_v24, %s2184_s4 }
  0xa1   : > { %782 = vrot.lane.b32.xlu1 %v773_v23, %s2186_s7 }
  0xa2   : > { %780 = vrot.lane.b32.xlu0 %v772_v24, %s2186_s7 }
 0x103   : > { %v231_v27 = vpop.permute.xlu1 %230 }
 0x104   : > { %v229_v28 = vpop.permute.xlu0 %228 }
 0x105   : > { %v233_v31 = vsel %vm232_vm10, %v229_v28, %v231_v27  ;;  %v234_v32 = vsel %vm232_vm10, %v231_v27, %v229_v28 }
 0x107   : > { %v238_v29 = vpop.permute.xlu1 %237 }
 0x108   : > { %v236_v30 = vpop.permute.xlu0 %235 }
 0x109   : > { %v240_v33 = vsel %vm200_vm8, %v238_v29, %v236_v30  ;;  %v239_v34 = vsel %vm200_vm8, %v236_v30, %v238_v29 }
 0x10a   : > { %v252_v36 = vsel %vm203_vm9, %v239_v34, %v234_v32  ;;  %1998 = vmatprep.subr.msk.mxu1 %vm260_vm4, %v239_v34  ;;  %v245_v37 = vsel %vm200_vm8, %v233_v31, %v240_v33 }
 0x10b   : > { %1999 = vmatpush1.msk.msra.mxu1 %vm260_vm4, %v245_v37  ;;  %2002 = vmatprep.subr.msk.mxu0 %vm260_vm4, %v252_v36  ;;  %v511_v39 = vpop.permute.xlu1 %510 }
 0x10c   : > { %2000 = vmatmul.mubr.msk.f32.vlgmr.msra.gmra.mxu1 %vm256_vm5, %v253_v35  ;;  %2003 = vmatpush1.msk.msra.mxu0 %vm260_vm4, %v233_v31  ;;  %v509_v41 = vpop.permute.xlu0 %508 }
 0x10d   : > { %v512_v43 = vsel %vm200_vm8, %v509_v41, %v511_v39  ;;  %v513_v44 = vsel %vm200_vm8, %v511_v39, %v509_v41  ;;  %2004 = vmatmul.mubr.msk.f32.vlgmr.msra.gmra.mxu0 %vm256_vm5, %v2001_v38  ;;  %593 = vmatprep.mubr.f32.mxu1 %v2185_v7 }
 0x10e   : > { %v514_v46 = vsel %vm200_vm8, %v506_v40, %v513_v44  ;;  %2006 = vmatprep.subr.msk.mxu1 %vm260_vm4, %v512_v43  ;;  %2010 = vmatprep.subr.msk.mxu0 %vm260_vm4, %v2269_v1  ;;  %v517_v47 = vsel %vm203_vm9, %v512_v43, %v507_v42 }
 0x10f   : > { %2007 = vmatpush1.msk.msra.mxu1 %vm260_vm4, %v514_v46  ;;  %v777_v48 = vpop.permute.xlu1 %776  ;;  %2011 = vmatpush1.msk.msra.mxu0 %vm260_vm4, %v2261_v0 }
 0x110   : > { %2008 = vmatmul.mubr.msk.f32.vlgmr.msra.gmra.mxu1 %vm256_vm5, %v2005_v45  ;;  %2014 = vmatprep.subr.msk.mxu1 %vm260_vm4, %v517_v47  ;;  %v775_v50 = vpop.permute.xlu0 %774 }
 0x111   : > { %675 = vmatprep.mubr.f32.mxu0 %v2185_v7  ;;  %2015 = vmatpush1.msk.msra.mxu1 %vm260_vm4, %v506_v40  ;;  %v778_v53 = vsel %vm232_vm10, %v775_v50, %v777_v48  ;;  %v779_v55 = vsel %vm232_vm10, %v777_v48, %v775_v50 }
 0x112   : > { %2012 = vmatmul.mubr.msk.f32.vlgmr.msra.gmra.mxu0 %vm256_vm5, %v2009_v49  ;;  %2022 = vmatprep.subr.msk.mxu1 %vm260_vm4, %v773_v23 }
 0x113   : > { %759 = vmatprep.mubr.f32.mxu1 %v2185_v7  ;;  %v783_v52 = vpop.permute.xlu1 %782  ;;  %865 = vmatprep.mubr.f32.mxu0 %v2185_v7 }
 0x114   : > { %2016 = vmatmul.mubr.msk.f32.vlgmr.msra.gmra.mxu1 %vm256_vm5, %v2013_v51  ;;  %v781_v54 = vpop.permute.xlu0 %780 }
 0x115   : > { %2023 = vmatpush1.msk.msra.mxu1 %vm260_vm4, %v772_v24  ;;  %v784_v56 = vsel %vm200_vm8, %v781_v54, %v783_v52  ;;  %v785_v57 = vsel %vm200_vm8, %v783_v52, %v781_v54  ;;  %949 = vmatprep.mubr.f32.mxu1 %v2185_v7 }
 0x116   : > { %v786_v60 = vsel %vm200_vm8, %v778_v53, %v785_v57  ;;  %2018 = vmatprep.subr.msk.mxu0 %vm260_vm4, %v784_v56  ;;  %v789_v61 = vsel %vm203_vm9, %v784_v56, %v779_v55 }
 0x117   : > { %2019 = vmatpush1.msk.msra.mxu0 %vm260_vm4, %v786_v60 }
 0x118   : > { %2020 = vmatmul.mubr.msk.f32.vlgmr.msra.gmra.mxu0 %vm256_vm5, %v2017_v58  ;;  %2024 = vmatmul.mubr.msk.f32.vlgmr.msra.gmra.mxu1 %vm256_vm5, %v2021_v59 }
 0x119   : > { %2026 = vmatprep.subr.msk.mxu0 %vm260_vm4, %v789_v61  ;;  %1033 = vmatprep.mubr.f32.mxu0 %v2185_v7 }
 0x11a   : > { %2027 = vmatpush1.msk.msra.mxu0 %vm260_vm4, %v778_v53  ;;  %1175 = vmatprep.mubr.f32.mxu1 %v2185_v7 }
 0x11c   : > { %2028 = vmatmul.mubr.msk.f32.vlgmr.msra.gmra.mxu0 %vm256_vm5, %v2025_v62 }
 0x11d   : > { %1255 = vmatprep.mubr.f32.mxu0 %v2185_v7 }
 0x153   : > { %v333_v63 = vpop.f32.mrf.mxu0 }
 0x155   : > { %v335_v1 = vpop.f32.mrf.mxu0 }
 0x1cc   : > { %v413_v2 = vpop.f32.mrf.mxu1 }
 0x1cd   : > { %v414_v5 = vadd.f32 %v413_v2, %v333_v63  ;;  %v495_v6 = vpop.f32.mrf.mxu0 }
 0x1ce   : > { %v415_v8 = vpop.f32.mrf.mxu1 }
 0x1cf   : > { %v416_v9 = vadd.f32 %v415_v8, %v335_v1  ;;  %v500_v12 = vadd.f32 %v495_v6, %v414_v5  ;;  %v497_v13 = vpop.f32.mrf.mxu0 }
 0x1d0   : > { %v595_v14 = vpop.f32.mrf.mxu1 }
 0x1d1   : > { %v501_v15 = vadd.f32 %v497_v13, %v416_v9  ;;  %v600_v16 = vadd.f32 %v595_v14, %v500_v12 }
 0x1d2   : > { %v597_v17 = vpop.f32.mrf.mxu1  ;;  %v677_v18 = vpop.f32.mrf.mxu0 }
 0x1d3   : > { %v601_v19 = vadd.f32 %v597_v17, %v501_v15  ;;  %v682_v20 = vadd.f32 %v677_v18, %v600_v16  ;;  %v2029_v18 = vld [vmem:[%s2619_s2 + $0xc] sm:$0xf] }
 0x1d4   : > { %v679_v23 = vpop.f32.mrf.mxu0  ;;  %v761_v24 = vpop.f32.mrf.mxu1 }
 0x1d5   : > { %v683_v25 = vadd.f32 %v679_v23, %v601_v19  ;;  %v766_v27 = vadd.f32 %v761_v24, %v682_v20 }
 0x1d6   : > { %v763_v26 = vpop.f32.mrf.mxu1 }
 0x1d7   : > { %v767_v30 = vadd.f32 %v763_v26, %v683_v25 }
 0x1d8   : > { %v867_v28 = vpop.f32.mrf.mxu0  ;;  %v951_v29 = vpop.f32.mrf.mxu1 }
 0x1d9   : > { %v872_v31 = vadd.f32 %v867_v28, %v766_v27 }
 0x1da   : > { %v869_v32 = vpop.f32.mrf.mxu0  ;;  %v953_v35 = vpop.f32.mrf.mxu1 }
 0x1db   : > { %v956_v33 = vadd.f32 %v951_v29, %v872_v31  ;;  %v873_v34 = vadd.f32 %v869_v32, %v767_v30  ;;  %v1099_v29 = vld [vmem:[%s2619_s2] sm:$0xf]  ;;  %v2036_v32 = vld [vmem:[%s2619_s2 + $0x18] sm:$0xf] }
 0x1dc   : > { %v1035_v36 = vpop.f32.mrf.mxu0 }
 0x1dd   : > { %v957_v37 = vadd.f32 %v953_v35, %v873_v34  ;;  %v1040_v38 = vadd.f32 %v1035_v36, %v956_v33 }
 0x1de   : > { %v1037_v39 = vpop.f32.mrf.mxu0 }
 0x1df   : > { %v1041_v40 = vadd.f32 %v1037_v39, %v957_v37  ;;  %v1047_v41 = vmul.f32 %v1040_v38, %v1040_v38  ;;  %v1042_v42 = vsel %vm260_vm4, %v1040_v38, 0.0  ;;  %v2040_v39 = vld [vmem:[%s2619_s2 + $0x4] sm:$0xf] }
 0x1e1   : > { %v1043_v43 = vsel %vm260_vm4, %v1041_v40, 0.0  ;;  %v1048_v44 = vmul.f32 %v1041_v40, %v1041_v40  ;;  %v1049_v46 = vsel %vm260_vm4, %v1047_v41, 0.0 }
 0x1e2   : > { %v1044_v45 = vadd.f32 %v1043_v43, %v1042_v42  ;;  %v2044_v42 = vld [vmem:[%s2619_s2 + $0x10] sm:$0xf] }
 0x1e3   : > { %v1050_v47 = vsel %vm260_vm4, %v1048_v44, 0.0 }
 0x1e4   : > { %1045 = vadd.xlane.f32.xlu0 %v1044_v45  ;;  %v1051_v48 = vadd.f32 %v1050_v47, %v1049_v46  ;;  %v2048_v45 = vld [vmem:[%s2619_s2 + $0x1c] sm:$0xf] }
 0x1e6   : > { %1052 = vadd.xlane.f32.xlu1 %v1051_v48 }
 0x26d   : > { %v1046_v49 = vpop.xlane.xlu0 %1045 }
 0x26e   : > { %v1054_v50 = vmul.f32 0.00390625, %v1046_v49 }
 0x26f   : > { %v1053_v51 = vpop.xlane.xlu1 %1052 }
 0x270   : > { %v1055_v52 = vmul.f32 0.00390625, %v1053_v51  ;;  %v1056_v53 = vmul.f32 %v1054_v50, %v1054_v50  ;;  %v1059_v57 = vsub.f32 %v1040_v38, %v1054_v50  ;;  %v1060_v58 = vsub.f32 %v1041_v40, %v1054_v50 }
 0x272   : > { %v1057_v54 = vsub.f32 %v1055_v52, %v1056_v53  ;;  %v2052_v52 = vld [vmem:[%s2619_s2 + $0x8] sm:$0xf] }
 0x274   : > { %v1058_v55 = vmax.f32 %v1057_v54, 0.0 }
 0x276   : > { %v1061_v56 = vadd.f32 1e-05, %v1058_v55  ;;  %v2056_v55 = vld [vmem:[%s2619_s2 + $0x14] sm:$0xf] }
 0x278   : > { %2116 = vrsqrt.f32 %v1061_v56 }
 0x285   : > { %v2117_v59 = vpop.eup %2116 }
 0x286   : > { %v1064_v60 = vmul.f32 %v2117_v59, %v1060_v58  ;;  %v1063_v61 = vmul.f32 %v2117_v59, %v1059_v57 }
 0x288   : > { %v1066_v62 = vmul.f32 0.2, %v1064_v60  ;;  %v1065_v63 = vmul.f32 0.2, %v1063_v61 }
 0x28a   : > { %v1068_v1 = vmax.f32 %v1064_v60, %v1066_v62  ;;  %v2442_v2 = vmax.f32 %v1063_v61, %v1065_v63 }
 0x28c   : > { %1071 = vrot.lane.b32.xlu1 %v1068_v1, %s2183_s30  ;;  %1069 = vrot.lane.b32.xlu0 %v2442_v2, %s2183_s30 }
 0x290   : > { %1077 = vrot.lane.b32.xlu1 %v1068_v1, %s2182_s29  ;;  %1075 = vrot.lane.b32.xlu0 %v2442_v2, %s2182_s29  ;;  %s161_s29 = sand.u32 1, %s2172_s13  }
 0x291   : > { %s1991_s30 = sshll.u32 %s161_s29, 3  ;;  %s1914_s20 = scalar_lea.sflag [#allocation3], %s161_s29 }
 0x294   : > { %1348 = vrot.lane.b32.xlu1 %v1068_v1, %s2184_s4  ;;  %1346 = vrot.lane.b32.xlu0 %v2442_v2, %s2184_s4 }
 0x2fe   : > { %v1072_v5 = vpop.permute.xlu1 %1071  ;;  %v1070_v6 = vpop.permute.xlu0 %1069 }
 0x2ff   : > { %v1073_v12 = vsel %vm212_vm1, %v1070_v6, %v1072_v5  ;;  %v1074_v13 = vsel %vm212_vm1, %v1072_v5, %v1070_v6 }
 0x302   : > { %v1078_v8 = vpop.permute.xlu1 %1077  ;;  %v1076_v9 = vpop.permute.xlu0 %1075 }
 0x303   : > { %v1079_v14 = vsel %vm219_vm0, %v1076_v9, %v1078_v8  ;;  %v1080_v15 = vsel %vm219_vm0, %v1078_v8, %v1076_v9 }
 0x304   : > { %v1081_v16 = vsel %vm2294_vm3, %v1073_v12, %v1080_v15  ;;  %v1082_v17 = vsel %vm2290_vm2, %v1074_v13, %v1079_v14  ;;  %v1614_v10 = vsel %vm2329_vm7, %v1080_v15, %v1073_v12  ;;  %v1615_v11 = vsel %vm2323_vm6, %v1079_v14, %v1074_v13 }
 0x305   : > { %1083 = vrot.lane.b32.xlu0 %v1081_v16, %s2184_s4  ;;  %1085 = vrot.lane.b32.xlu1 %v1082_v17, %s2184_s4 }
 0x306   : > { %2030 = vmatprep.subr.msk.mxu1 %vm260_vm4, %v1082_v17  ;;  %v1349_v19 = vpop.permute.xlu1 %1348  ;;  %v1347_v20 = vpop.permute.xlu0 %1346 }
 0x307   : > { %2031 = vmatpush1.msk.msra.mxu1 %vm260_vm4, %v1081_v16  ;;  %v1350_v33 = vsel %vm232_vm10, %v1347_v20, %v1349_v19  ;;  %v1351_v36 = vsel %vm232_vm10, %v1349_v19, %v1347_v20 }
 0x308   : > { %2032 = vmatmul.mubr.msk.f32.vlgmr.msra.gmra.mxu1 %vm256_vm5, %v2029_v18 }
 0x309   : > { %1089 = vrot.lane.b32.xlu0 %v1081_v16, %s2186_s7  ;;  %1091 = vrot.lane.b32.xlu1 %v1082_v17, %s2186_s7 }
 0x30a   : > { %1337 = vmatprep.mubr.f32.mxu1 %v2185_v7 }
 0x30d   : > { %1352 = vrot.lane.b32.xlu0 %v2442_v2, %s2186_s7  ;;  %1354 = vrot.lane.b32.xlu1 %v1068_v1, %s2186_s7 }
 0x311   : > { %1616 = vrot.lane.b32.xlu0 %v1614_v10, %s2184_s4  ;;  %1618 = vrot.lane.b32.xlu1 %v1615_v11, %s2184_s4  ;;  %s2070_s4 = sshll.u32 %s2229_s16, 7  ;;  %s2126_s16 = scalar_lea.vmem %s2125_s26, 256 }
 0x312   : > { %s1926_s19 = scalar_lea.hbm %s2620_s3, %s2070_s4 }
 0x315   : > { %1622 = vrot.lane.b32.xlu0 %v1614_v10, %s2186_s7  ;;  %1624 = vrot.lane.b32.xlu1 %v1615_v11, %s2186_s7  ;;  %s163_s7 = scalar_lea.vmem [#allocation2], %s1991_s30 }
 0x316   : > { %s1928_s10 = sshll.u32 %s163_s7, 4  ;;  %s1929_s10 = int_to_ptr.vmem [resolvable:$true] %s1928_s10 }
 0x317   : > { %s2120_s24 = scalar_lea.vmem %s1929_s10, 128  ;;  %p2127_p0 = scmp.lt.s32.totalorder %s1929_s10, %s2125_s26 }
 0x318   : > { %p2121_p11 = scmp.ne.s32.totalorder %s1929_s10, %s2120_s24  ;;  %p2128_p1 = scmp.lt.s32.totalorder %s2126_s16, %s2120_s24 }
 0x31a   : > { %p2122_p12 = pnand %p2121_p11, %p2246_p5  ;;  %p2129_p2 = por %p2128_p1, %p2127_p0 }
 0x31c   : > { %p2123_p13 = pneg %p2122_p12 }
 0x31e   : > { %p2130_p3 = pnand %p2129_p2, %p2123_p13 }
 0x377   : > { %v1086_v23 = vpop.permute.xlu1 %1085  ;;  %v1084_v24 = vpop.permute.xlu0 %1083 }
 0x378   : > { %v1087_v22 = vsel %vm232_vm10, %v1084_v24, %v1086_v23  ;;  %v1088_v21 = vsel %vm232_vm10, %v1086_v23, %v1084_v24 }
 0x37b   : > { %v1092_v25 = vpop.permute.xlu1 %1091  ;;  %v1090_v26 = vpop.permute.xlu0 %1089 }
 0x37c   : > { %v1093_v27 = vsel %vm200_vm8, %v1090_v26, %v1092_v25  ;;  %v1094_v28 = vsel %vm200_vm8, %v1092_v25, %v1090_v26 }
 0x37d   : > { %v1095_v30 = vsel %vm200_vm8, %v1087_v22, %v1094_v28  ;;  %2033 = vmatprep.subr.msk.mxu0 %vm260_vm4, %v1093_v27  ;;  %v1098_v31 = vsel %vm203_vm9, %v1093_v27, %v1088_v21 }
 0x37e   : > { %2034 = vmatpush1.msk.msra.mxu0 %vm260_vm4, %v1095_v30  ;;  %2037 = vmatprep.subr.msk.mxu1 %vm260_vm4, %v1098_v31 }
 0x37f   : > { %v1355_v34 = vpop.permute.xlu1 %1354  ;;  %2035 = vmatmul.mubr.msk.f32.vlgmr.msra.gmra.mxu0 %vm256_vm5, %v1099_v29  ;;  %2038 = vmatpush1.msk.msra.mxu1 %vm260_vm4, %v1087_v22  ;;  %v1353_v35 = vpop.permute.xlu0 %1352 }
 0x380   : > { %v1356_v37 = vsel %vm200_vm8, %v1353_v35, %v1355_v34  ;;  %v1357_v38 = vsel %vm200_vm8, %v1355_v34, %v1353_v35  ;;  %2045 = vmatprep.subr.msk.mxu1 %vm260_vm4, %v1068_v1  ;;  %2039 = vmatmul.mubr.msk.f32.vlgmr.msra.gmra.mxu1 %vm256_vm5, %v2036_v32 }
 0x381   : > { %v1358_v40 = vsel %vm200_vm8, %v1350_v33, %v1357_v38  ;;  %2041 = vmatprep.subr.msk.mxu0 %vm260_vm4, %v1356_v37  ;;  %2046 = vmatpush1.msk.msra.mxu1 %vm260_vm4, %v2442_v2  ;;  %v1361_v41 = vsel %vm203_vm9, %v1356_v37, %v1351_v36 }
 0x382   : > { %2042 = vmatpush1.msk.msra.mxu0 %vm260_vm4, %v1358_v40  ;;  %1437 = vmatprep.mubr.f32.mxu0 %v2185_v7 }
 0x383   : > { %v1619_v43 = vpop.permute.xlu1 %1618  ;;  %2043 = vmatmul.mubr.msk.f32.vlgmr.msra.gmra.mxu0 %vm256_vm5, %v2040_v39  ;;  %2049 = vmatprep.subr.msk.mxu0 %vm260_vm4, %v1361_v41  ;;  %v1617_v44 = vpop.permute.xlu0 %1616 }
 0x384   : > { %2050 = vmatpush1.msk.msra.mxu0 %vm260_vm4, %v1350_v33  ;;  %1521 = vmatprep.mubr.f32.mxu1 %v2185_v7  ;;  %v1620_v46 = vsel %vm232_vm10, %v1617_v44, %v1619_v43  ;;  %v1621_v49 = vsel %vm232_vm10, %v1619_v43, %v1617_v44 }
 0x385   : > { %2057 = vmatprep.subr.msk.mxu0 %vm260_vm4, %v1615_v11  ;;  %2047 = vmatmul.mubr.msk.f32.vlgmr.msra.gmra.mxu1 %vm256_vm5, %v2044_v42 }
 0x386   : > { %1605 = vmatprep.mubr.f32.mxu0 %v2185_v7  ;;  %1707 = vmatprep.mubr.f32.mxu1 %v2185_v7 }
 0x387   : > { %v1625_v47 = vpop.permute.xlu1 %1624  ;;  %2051 = vmatmul.mubr.msk.f32.vlgmr.msra.gmra.mxu0 %vm256_vm5, %v2048_v45  ;;  %v1623_v48 = vpop.permute.xlu0 %1622 }
 0x388   : > { %2058 = vmatpush1.msk.msra.mxu0 %vm260_vm4, %v1614_v10  ;;  %v1626_v50 = vsel %vm200_vm8, %v1623_v48, %v1625_v47  ;;  %v1627_v51 = vsel %vm200_vm8, %v1625_v47, %v1623_v48  ;;  %1791 = vmatprep.mubr.f32.mxu0 %v2185_v7 }
 0x389   : > { %v1628_v53 = vsel %vm200_vm8, %v1620_v46, %v1627_v51  ;;  %2053 = vmatprep.subr.msk.mxu1 %vm260_vm4, %v1626_v50  ;;  %v1631_v54 = vsel %vm203_vm9, %v1626_v50, %v1621_v49 }
 0x38a   : > { %2054 = vmatpush1.msk.msra.mxu1 %vm260_vm4, %v1628_v53 }
 0x38b   : > { %2055 = vmatmul.mubr.msk.f32.vlgmr.msra.gmra.mxu1 %vm256_vm5, %v2052_v52  ;;  %2061 = vmatprep.subr.msk.mxu1 %vm260_vm4, %v1631_v54 }
 0x38c   : > { %2062 = vmatpush1.msk.msra.mxu1 %vm260_vm4, %v1620_v46  ;;  %2059 = vmatmul.mubr.msk.f32.vlgmr.msra.gmra.mxu0 %vm256_vm5, %v2056_v55 }
 0x38d   : > { %1875 = vmatprep.mubr.f32.mxu1 %v2185_v7 }
 0x38f   : > { %2063 = vmatmul.mubr.msk.f32.vlgmr.msra.gmra.mxu1 %vm256_vm5, %v2060_v3 }
 0x3c8   : > { %v1177_v4 = vpop.f32.mrf.mxu1 }
 0x3ca   : > { %v1179_v56 = vpop.f32.mrf.mxu1 }
 0x43f   : > { %v1257_v57 = vpop.f32.mrf.mxu0 }
 0x440   : > { %v1258_v58 = vadd.f32 %v1257_v57, %v1177_v4  ;;  %v1339_v59 = vpop.f32.mrf.mxu1 }
 0x441   : > { %v1259_v60 = vpop.f32.mrf.mxu0 }
 0x442   : > { %v1260_v61 = vadd.f32 %v1259_v60, %v1179_v56  ;;  %v1344_v62 = vadd.f32 %v1339_v59, %v1258_v58  ;;  %v1341_v63 = vpop.f32.mrf.mxu1 }
 0x443   : > { %v1439_v1 = vpop.f32.mrf.mxu0 }
 0x444   : > { %v1345_v2 = vadd.f32 %v1341_v63, %v1260_v61  ;;  %v1444_v5 = vadd.f32 %v1439_v1, %v1344_v62 }
 0x445   : > { %v1441_v6 = vpop.f32.mrf.mxu0  ;;  %v1523_v8 = vpop.f32.mrf.mxu1 }
 0x446   : > { %v1445_v9 = vadd.f32 %v1441_v6, %v1345_v2  ;;  %v1528_v12 = vadd.f32 %v1523_v8, %v1444_v5 }
 0x447   : > { %v1525_v13 = vpop.f32.mrf.mxu1  ;;  %v1607_v7 = vpop.f32.mrf.mxu0 }
 0x448   : > { %v1529_v14 = vadd.f32 %v1525_v13, %v1445_v9  ;;  %v1612_v16 = vadd.f32 %v1607_v7, %v1528_v12 }
 0x449   : > { %v1609_v15 = vpop.f32.mrf.mxu0 }
 0x44a   : > { %v1613_v18 = vadd.f32 %v1609_v15, %v1529_v14 }
 0x44b   : > { %v1709_v17 = vpop.f32.mrf.mxu1 }
 0x44c   : > { %v1714_v10 = vadd.f32 %v1709_v17, %v1612_v16  ;;  %v1793_v11 = vpop.f32.mrf.mxu0 }
 0x44d   : > { %v1711_v19 = vpop.f32.mrf.mxu1 }
 0x44e   : > { %v1715_v20 = vadd.f32 %v1711_v19, %v1613_v18  ;;  %v1798_v23 = vadd.f32 %v1793_v11, %v1714_v10  ;;  %v1795_v24 = vpop.f32.mrf.mxu0 }
 0x44f   : > { %v1877_v25 = vpop.f32.mrf.mxu1 }
 0x450   : > { %v1799_v26 = vadd.f32 %v1795_v24, %v1715_v20  ;;  %v1882_v22 = vadd.f32 %v1877_v25, %v1798_v23 }
 0x451   : > { %v1879_v21 = vpop.f32.mrf.mxu1 }
 0x452   : > { %v1883_v27 = vadd.f32 %v1879_v21, %v1799_v26  ;;  %v1889_v28 = vmul.f32 %v1882_v22, %v1882_v22  ;;  %v1884_v29 = vsel %vm260_vm4, %v1882_v22, 0.0 }
 0x454   : > { %v1885_v30 = vsel %vm260_vm4, %v1883_v27, 0.0  ;;  %v1890_v31 = vmul.f32 %v1883_v27, %v1883_v27  ;;  %v1891_v33 = vsel %vm260_vm4, %v1889_v28, 0.0 }
 0x455   : > { %v1886_v32 = vadd.f32 %v1885_v30, %v1884_v29 }
 0x456   : > { %v1892_v34 = vsel %vm260_vm4, %v1890_v31, 0.0 }
 0x457   : > { %1887 = vadd.xlane.f32.xlu0 %v1886_v32  ;;  %v1893_v35 = vadd.f32 %v1892_v34, %v1891_v33 }
 0x459   : > { %1894 = vadd.xlane.f32.xlu1 %v1893_v35 }
 0x4e0   : > { %v1888_v36 = vpop.xlane.xlu0 %1887 }
 0x4e1   : > { %v1896_v37 = vmul.f32 0.00390625, %v1888_v36 }
 0x4e2   : > { %v1895_v38 = vpop.xlane.xlu1 %1894 }
 0x4e3   : > { %v1897_v39 = vmul.f32 0.00390625, %v1895_v38  ;;  %v1898_v40 = vmul.f32 %v1896_v37, %v1896_v37  ;;  %v1901_v44 = vsub.f32 %v1882_v22, %v1896_v37  ;;  %v1902_v45 = vsub.f32 %v1883_v27, %v1896_v37 }
 0x4e5   : > { %v1899_v41 = vsub.f32 %v1897_v39, %v1898_v40 }
 0x4e7   : > { %v1900_v42 = vmax.f32 %v1899_v41, 0.0 }
 0x4e9   : > { %v1903_v43 = vadd.f32 1e-05, %v1900_v42 }
 0x4eb   : > { %2118 = vrsqrt.f32 %v1903_v43 }
 0x4f8   : > { %v2119_v46 = vpop.eup %2118 }
 0x4f9   : > { %v1905_v47 = vmul.f32 %v2119_v46, %v1901_v44  ;;  %v1906_v48 = vmul.f32 %v2119_v46, %v1902_v45 }
 0x4fb   : > { %v1909_v49 = vcombine.low %v1905_v47, %v1906_v48 }
 0x4fd   : > { %v1911_v50 = vadd.f32 %v1909_v49, %v2261_v0 }
 0x4ff   : > { %1912 = vst [vmem:[%s163_s7] sm:$0xff] %v1911_v50 }
 0x500   : > { %2133 = shalt.err (!%p2130_p3)
}
 0x501   : > { %s2134_s27 = scalar_lea.hbm %s1926_s19, 128  ;;  %s2138_s6 = scalar_lea.hbm %s2620_s3, 256 }
 0x502   : > { %p2135_p4 = scmp.ne.s32.totalorder %s1926_s19, %s2134_s27  ;;  %p2139_p9 = scmp.lt.s32.totalorder %s1926_s19, %s2620_s3 }
 0x503   : > { %p2140_p10 = scmp.lt.s32.totalorder %s2138_s6, %s2134_s27 }
 0x504   : > { %p2136_p7 = pnand %p2135_p4, %p2246_p5 }
 0x505   : > { %p2141_p11 = por %p2140_p10, %p2139_p9 }
 0x506   : > { %p2137_p8 = pneg %p2136_p7 }
 0x508   : > { %p2142_p12 = pnand %p2141_p11, %p2137_p8 }
 0x50a   : > { %2145 = shalt.err (!%p2142_p12)
}
 0x50b   : > { %2071 = dma.vmem_to_hbm [thread:$0]  (%p2246_p5), %s1929_s10, 128, %s1926_s19, %s1914_s20  }
 0x50c PF: > { %p2077_p13 = scmp.ge.s32.totalorder %s2180_s15, 2  ;;  %s1940_s29 = sand.u32 1, %s2168_s12  }
 0x50d   : > { %s1941_s30 = scalar_lea.sflag [#allocation3], %s1940_s29 }
 0x50e   : > { %p2074_p0 = pnand %p2077_p13, %p2250_p6 }
 0x510   : > { %p2075_p1 = pneg %p2074_p0 }
 0x512   : > { %2163 = dma.done.wait (%p2075_p1), %s1941_s30, 128  }
 0x513   : > { %2165 = vsyncadd (%p2075_p1), %s1941_s30, 4294967168  ;;  %p13_p2 = scmp.ge.s32.totalorder %s2233_s18, 4   ;;  %s2631_s12 = smov %s2172_s13 }
 0x514   : > { %s2632_s13 = smov %s2176_s14  ;;  %s2633_s14 = smov %s2244_s21 }
 0x515   : > { %s2634_s15 = smov %s2233_s18  ;;  %15 = sbr.rel (!%p13_p2) target bundleno = 3 (0x3), region = 83 }
 0x51a   :  { %1946 = vsyncpa [#allocation3], 1 }
 0x51b   :  { %1948 = vsyncpa [#allocation3 + $0x1], 1 }

</bundles_post_ra>
